<compile_context>
chip_gen: v7x
topology: tpu7x:2x2x1
jax: 0.10.0
libtpu: 0.0.40
codegen_flags: <defaults>
</compile_context>

<pallas_src>
import jax
import jax.numpy as jnp
from jax.experimental import pallas as pl
from jax.experimental.pallas import tpu as pltpu

_LANE_WIDTHS = (8192, 4096, 2048, 1024, 512, 256, 128)

# Test-only knob: cap rows per block so small inputs exercise the multi-chunk /
# ragged-tail / megacore-split code paths.
_MAX_BLOCK_ROWS = None

_SMEM_SPEC = pl.BlockSpec(memory_space=pltpu.MemorySpace.SMEM)


def _bce_elem(x, z):
    """Numerically-stable BCE-with-logits (== F.binary_cross_entropy_with_logits)."""
    return jnp.maximum(x, 0.0) - x * z + jnp.log1p(jnp.exp(-jnp.abs(x)))


# --------------------------- hardware budgets ---------------------------

def _vmem_physical_bytes():
    try:
        info = pltpu.get_tpu_info()
        v = getattr(info, "vmem_capacity_bytes", None)
        if v:
            return int(v)
    except Exception:
        pass
    # Fallback by device kind: v7x has 64 MiB/TC; v4/v5e/v5p/v6e have 128 MiB.
    try:
        kind = jax.devices()[0].device_kind.lower()
        if "v7" in kind:
            return 64 * 1024 * 1024
    except Exception:
        pass
    return 128 * 1024 * 1024


def _vmem_budgets():
    """(live double-buffered block budget, vmem_limit_bytes)."""
    phys = _vmem_physical_bytes()
    if phys >= (128 << 20):                       # v4 / v5e / v5p / v6e
        return 48 << 20, 96 << 20
    return max(phys // 4, 8 << 20), max(phys * 3 // 4, 16 << 20)   # v7x: 16 / 48 MiB


# --------------------------- layout / tiling ---------------------------

def _choose_layout(total, last_dim):
    """Lane-dense 2-D view (rows, C) of `total` elements.

    Always an exact, padding-free factorization (free reshape).  Prefers a big
    multiple-of-128 lane width; falls back to the original trailing dim."""
    for c in _LANE_WIDTHS:
        if total % c == 0:
            return total // c, c
    return total // last_dim, last_dim


def _pick_tm(rows, c, live_bytes_per_elem, budget_bytes):
    """Rows per block, byte-targeted (no divisor search, so it never collapses
    to 8-row tiles).  Remainder rows are handled by a cdiv grid plus in-kernel
    masking / masked boundary writes."""
    if rows <= 8:
        return rows                       # block dim == full array dim (legal)
    tm = budget_bytes // max(1, live_bytes_per_elem * c)
    tm = min(rows, max(8, tm))
    if _MAX_BLOCK_ROWS is not None:
        tm = min(tm, max(8, _MAX_BLOCK_ROWS))
    tm -= tm % 8
    return max(tm, 8)


def _tile_spec(shape, index_map, triple_buffer):
    """BlockSpec; requests 3-deep input buffering for small tiles if supported."""
    if triple_buffer:
        buffered = getattr(pl, "Buffered", None)
        if buffered is not None:
            try:
                return pl.BlockSpec(shape, index_map, pipeline_mode=buffered(3))
            except TypeError:
                pass
    return pl.BlockSpec(shape, index_map)


# ------------------------------ wrappers ------------------------------

def _pallas_bce_sum(pred2d, tgt2d, w2d, w_mode, scale):
    """sum(BCE(pred, tgt) [* weight]) * scale (scale comes in via SMEM)."""
    rows, c = pred2d.shape
    in_bytes = pred2d.dtype.itemsize + tgt2d.dtype.itemsize
    if w_mode == "full":
        in_bytes += w2d.dtype.itemsize
    budget, limit = _vmem_budgets()
    tm = _pick_tm(rows, c, 2 * in_bytes, budget)      # 2x: double-buffered inputs
    n_chunks = pl.cdiv(rows, tm)
    # Leading "parallel" axis so v7x's two TensorCores each reduce half of the
    # chunks (harmless on single-core v5e/v6e).  cdiv split handles odd counts.
    nsplit = 2 if n_chunks >= 2 else 1
    g2 = pl.cdiv(n_chunks, nsplit)
    needs_mask = (nsplit * g2 * tm) != rows           # ragged tail / phantom chunk
    acc_rows = 8 if tm % 8 == 0 else 1

    if needs_mask:
        def data_map(i, j):
            # Clamp phantom steps (odd chunk counts) onto the last real chunk;
            # their contribution is zeroed by the in-kernel row mask.
            return (jnp.minimum(i * g2 + j, n_chunks - 1), 0)
    else:
        def data_map(i, j):
            return (i * g2 + j, 0)

    triple = (tm * c * in_bytes < (1 << 20)) and (nsplit * g2 >= 4)
    tile = _tile_spec((tm, c), data_map, triple)

    def kernel(scale_ref, *refs):
        if w_mode in ("full", "row"):
            p_ref, t_ref, w_ref, o_ref, acc_ref = refs
        else:
            p_ref, t_ref, o_ref, acc_ref = refs
        i = pl.program_id(0)
        j = pl.program_id(1)

        # The inner (reduction) axis is ARBITRARY: it runs sequentially per
        # core, so resetting at j == 0 and flushing at j == g2 - 1 is safe.
        # (Do NOT mark it parallel.)
        @pl.when(j == 0)
        def _():
            acc_ref[...] = jnp.zeros_like(acc_ref)

        x = p_ref[...].astype(jnp.float32)
        z = t_ref[...].astype(jnp.float32)
        loss = _bce_elem(x, z)
        if w_mode in ("full", "row"):
            loss = loss * w_ref[...].astype(jnp.float32)     # (tm,1) broadcasts
        if needs_mask:
            row0 = (i * g2 + j) * tm
            rid = jax.lax.broadcasted_iota(jnp.int32, (tm, c), 0) + row0
            loss = jnp.where(rid < rows, loss, 0.0)
        if acc_rows == 8:
            # Pure-VALU accumulation; cross-sublane/lane reduce deferred to the
            # epilogue below.
            acc_ref[...] += jnp.sum(loss.reshape(tm // 8, 8, c), axis=0)
        else:
            acc_ref[...] += jnp.sum(loss, axis=0, keepdims=True)

        @pl.when(j == g2 - 1)
        def _():
            part = jnp.sum(acc_ref[...]) * scale_ref[0]
            o_ref[...] = jnp.zeros(o_ref.shape, o_ref.dtype) + part

    in_specs = [_SMEM_SPEC, tile, tile]
    args = [scale, pred2d, tgt2d]
    if w_mode == "full":
        in_specs.append(tile)
        args.append(w2d)
    elif w_mode == "row":
        in_specs.append(pl.BlockSpec((tm, 1), data_map))
        args.append(w2d)

    out = pl.pallas_call(
        kernel,
        out_shape=jax.ShapeDtypeStruct((nsplit, 8, 128), jnp.float32),
        grid_spec=pltpu.PrefetchScalarGridSpec(
            num_scalar_prefetch=0,
            grid=(nsplit, g2),
            in_specs=in_specs,
            out_specs=pl.BlockSpec((1, 8, 128), lambda i, j: (i, 0, 0)),
            scratch_shapes=[pltpu.VMEM((acc_rows, c), jnp.float32)],
        ),
        compiler_params=pltpu.CompilerParams(
            dimension_semantics=(pltpu.PARALLEL, pltpu.ARBITRARY),
            vmem_limit_bytes=limit,
        ),
    )(*args)
    # Each split's scaled partial sum sits at [i, 0, 0].
    return jnp.sum(out[:, 0, 0])


def _pallas_bce_none(pred2d, tgt2d, w2d, w_mode, scale, out_dtype):
    """Elementwise BCE(pred, tgt) [* weight] * scale, output dtype = pred dtype."""
    rows, c = pred2d.shape
    stream_bytes = (pred2d.dtype.itemsize + tgt2d.dtype.itemsize
                    + jnp.dtype(out_dtype).itemsize)
    if w_mode == "full":
        stream_bytes += w2d.dtype.itemsize
    budget, limit = _vmem_budgets()
    tm = _pick_tm(rows, c, 2 * stream_bytes, budget)
    n_chunks = pl.cdiv(rows, tm)

    triple = (tm * c * stream_bytes < (1 << 20)) and (n_chunks >= 4)
    tile = _tile_spec((tm, c), lambda i: (i, 0), triple)
    out_tile = pl.BlockSpec((tm, c), lambda i: (i, 0))   # ragged tail: OOB writes dropped

    def kernel(scale_ref, *refs):
        if w_mode in ("full", "row"):
            p_ref, t_ref, w_ref, o_ref = refs
        else:
            p_ref, t_ref, o_ref = refs
        x = p_ref[...].astype(jnp.float32)
        z = t_ref[...].astype(jnp.float32)
        loss = _bce_elem(x, z)
        if w_mode in ("full", "row"):
            loss = loss * w_ref[...].astype(jnp.float32)
        o_ref[...] = (loss * scale_ref[0]).astype(o_ref.dtype)

    in_specs = [_SMEM_SPEC, tile, tile]
    args = [scale, pred2d, tgt2d]
    if w_mode == "full":
        in_specs.append(tile)
        args.append(w2d)
    elif w_mode == "row":
        in_specs.append(pl.BlockSpec((tm, 1), lambda i: (i, 0)))
        args.append(w2d)

    return pl.pallas_call(
        kernel,
        out_shape=jax.ShapeDtypeStruct((rows, c), out_dtype),
        grid_spec=pltpu.PrefetchScalarGridSpec(
            num_scalar_prefetch=0,
            grid=(n_chunks,),
            in_specs=in_specs,
            out_specs=out_tile,
        ),
        compiler_params=pltpu.CompilerParams(
            # A single "parallel" chunk axis is sharded across TensorCores by
            # the Mosaic runtime on multi-core chips (v7x).
            dimension_semantics=(pltpu.PARALLEL,),
            vmem_limit_bytes=limit,
        ),
    )(*args)


# ------------------------------ module ------------------------------

class MasksLoss:
    """JAX/Pallas port of plugin.models.losses.detr_loss.MasksLoss."""

    def __init__(self, reduction='mean', loss_weight=1.0):
        self.reduction = reduction
        self.loss_weight = loss_weight

    def __call__(self, pred, target, weight=None, avg_factor=None,
                 reduction_override=None):
        assert reduction_override in (None, 'none', 'mean', 'sum')
        reduction = reduction_override if reduction_override else self.reduction

        # label.numel() == 0  ->  pred.sum() * 0
        if target.size == 0:
            return (jnp.sum(pred) * 0.0) * self.loss_weight

        assert pred.shape == target.shape
        orig_shape = pred.shape
        total = pred.size
        last = orig_shape[-1]
        lead = total // last

        # Classify weight: never materialize a broadcast for the common cases.
        w_mode, w_arr, w_scalar = "none", None, None
        if weight is not None:
            weight = jnp.asarray(weight)
            if weight.size == 1:
                w_scalar = weight.reshape(()).astype(jnp.float32)
            elif weight.shape == pred.shape:
                w_mode, w_arr = "full", weight
            elif weight.shape == orig_shape[:-1] + (1,):
                w_mode, w_arr = "row", weight
            else:
                # TODO(synk): uncommon broadcast layouts still materialize to full shape.
                w_mode, w_arr = "full", jnp.broadcast_to(weight, pred.shape)

        # Lane-dense 2-D view (always an exact, free reshape — never padded).
        if w_mode == "row":
            rows, c = lead, last     # keep per-query rows so weight is a (rows,1) column
        else:
            rows, c = _choose_layout(total, last)
        pred2d = pred.reshape(rows, c)
        tgt2d = target.reshape(rows, c)
        if w_mode == "full":
            w2d = w_arr.reshape(rows, c)
        elif w_mode == "row":
            w2d = w_arr.reshape(rows, 1)
        else:
            w2d = None

        if reduction == 'none':
            # TODO(synk): mmdet raises if avg_factor is given with reduction='none'; not handled.
            scale_val = jnp.float32(self.loss_weight)
            if w_scalar is not None:
                scale_val = scale_val * w_scalar
            scale = jnp.reshape(scale_val, (1,)).astype(jnp.float32)
            loss2d = _pallas_bce_none(pred2d, tgt2d, w2d, w_mode, scale, pred.dtype)
            return loss2d.reshape(orig_shape)

        if reduction == 'mean':
            if avg_factor is None:
                denom = jnp.float32(total)
            else:
                denom = jnp.asarray(avg_factor, jnp.float32)
            scale_val = jnp.float32(self.loss_weight) / denom
        else:  # 'sum'
            # TODO(synk): mmdet raises if avg_factor is combined with 'sum'; ignored here.
            scale_val = jnp.float32(self.loss_weight)
        if w_scalar is not None:
            scale_val = scale_val * w_scalar
        scale = jnp.reshape(scale_val, (1,)).astype(jnp.float32)
        return _pallas_bce_sum(pred2d, tgt2d, w2d, w_mode, scale)


# ------------------------------ tests ------------------------------

def _ref_bce(pred, target):
    p = pred.astype(jnp.float32)
    t = target.astype(jnp.float32)
    return jnp.maximum(p, 0.0) - p * t + jnp.log1p(jnp.exp(-jnp.abs(p)))


if __name__ == "__main__":
    key = jax.random.PRNGKey(0)
    ks = jax.random.split(key, 8)

    loss_mod = MasksLoss(reduction='mean', loss_weight=1.0)

    # --- case 1: lane-aligned shape, all reductions + elementwise weight ----
    B, NQ, NPTS = 2, 8, 128
    pred = jax.random.normal(ks[0], (B, NQ, NPTS), dtype=jnp.float32)
    target = (jax.random.uniform(ks[1], (B, NQ, NPTS)) > 0.5).astype(jnp.float32)
    weight = jax.random.uniform(ks[2], (B, NQ, NPTS), dtype=jnp.float32)
    ref = _ref_bce(pred, target)

    out_mean = jax.block_until_ready(loss_mod(pred, target))
    out_wavg = jax.block_until_ready(
        loss_mod(pred, target, weight=weight, avg_factor=37.0))
    out_sum = jax.block_until_ready(loss_mod(pred, target, reduction_override='sum'))
    out_none = jax.block_until_ready(loss_mod(pred, target, reduction_override='none'))
    assert jnp.allclose(out_mean, ref.mean(), rtol=1e-5, atol=1e-5)
    assert jnp.allclose(out_wavg, (ref * weight).sum() / 37.0, rtol=1e-5, atol=1e-5)
    assert jnp.allclose(out_sum, ref.sum(), rtol=1e-4, atol=1e-4)
    assert jnp.allclose(out_none, ref, rtol=1e-5, atol=1e-5)

    # --- case 2: npts not a multiple of 128 (no-pad fallback), bf16 target ---
    NPTS2 = 100
    pred2 = jax.random.normal(ks[3], (B, NQ, NPTS2), dtype=jnp.float32)
    target2 = (jax.random.uniform(ks[4], (B, NQ, NPTS2)) > 0.5).astype(jnp.bfloat16)
    ref2 = _ref_bce(pred2, target2)
    out2_mean = jax.block_until_ready(loss_mod(pred2, target2))
    out2_none = jax.block_until_ready(loss_mod(pred2, target2, reduction_override='none'))
    assert jnp.allclose(out2_mean, ref2.mean(), rtol=1e-5, atol=1e-5)
    assert jnp.allclose(out2_none, ref2, rtol=1e-5, atol=1e-5)

    # --- case 3: multi-chunk grid, odd chunk count, ragged tail, core split ---
    B3, NQ3, NPTS3 = 2, 23, 128
    pred3 = jax.random.normal(ks[5], (B3, NQ3, NPTS3), dtype=jnp.float32)
    target3 = (jax.random.uniform(ks[6], (B3, NQ3, NPTS3)) > 0.5).astype(jnp.float32)
    wrow = jax.random.uniform(ks[7], (B3, NQ3, 1), dtype=jnp.float32)
    ref3 = _ref_bce(pred3, target3)

    _MAX_BLOCK_ROWS = 8   # force small blocks -> cdiv grid, masked tail, 2-way split
    out3_sum = jax.block_until_ready(loss_mod(pred3, target3, reduction_override='sum'))
    out3_wmean = jax.block_until_ready(loss_mod(pred3, target3, weight=wrow))
    out3_none = jax.block_until_ready(loss_mod(pred3, target3, reduction_override='none'))
    _MAX_BLOCK_ROWS = None
    assert jnp.allclose(out3_sum, ref3.sum(), rtol=1e-4, atol=1e-4)
    assert jnp.allclose(out3_wmean, (ref3 * wrow).mean(), rtol=1e-5, atol=1e-5)
    assert jnp.allclose(out3_none, ref3, rtol=1e-5, atol=1e-5)

    # --- case 4: scalar weight folded into the SMEM scale; empty target ------
    out4 = jax.block_until_ready(
        loss_mod(pred, target, weight=jnp.float32(0.5), reduction_override='sum'))
    assert jnp.allclose(out4, 0.5 * ref.sum(), rtol=1e-4, atol=1e-4)
    empty = jnp.zeros((2, 0, 128), jnp.float32)
    out5 = jax.block_until_ready(loss_mod(empty, empty))
    assert jnp.allclose(out5, 0.0)

    print("KERNEL_OK")
</pallas_src>

<mosaic_0001>
module attributes {stable_mosaic.version = 11 : i64} {
  func.func @kernel(%arg0: i32, %arg1: i32, %arg2: memref<1xf32, #tpu.memory_space<smem>>, %arg3: memref<1x2048xf32, #tpu.memory_space<vmem>>, %arg4: memref<1x2048xf32, #tpu.memory_space<vmem>>, %arg5: memref<1x8x128xf32, #tpu.memory_space<vmem>>, %arg6: memref<1x2048xf32, #tpu.memory_space<vmem>>) attributes {dimension_semantics = [#tpu.dimension_semantics<parallel>, #tpu.dimension_semantics<arbitrary>], iteration_bounds = array<i64: 1, 1>, scalar_prefetch = 0 : i64, scratch_operands = 1 : i64, tpu.core_type = #tpu.core_type<tc>, window_params = [{transform_indices = @transform_0, window_bounds = array<i64: 1>}, {transform_indices = @transform_1, window_bounds = array<i64: 1, 2048>}, {transform_indices = @transform_2, window_bounds = array<i64: 1, 2048>}, {transform_indices = @transform_3, window_bounds = array<i64: 1, 8, 128>}]} {
    %c0_i32 = arith.constant 0 : i32
    %0 = arith.cmpi eq, %arg1, %c0_i32 : i32
    %1 = arith.extui %0 : i1 to i32
    %c0_i32_0 = arith.constant 0 : i32
    %2 = arith.cmpi ne, %1, %c0_i32_0 : i32
    scf.if %2 {
      %cst_12 = arith.constant 0.000000e+00 : f32
      %23 = vector.broadcast %cst_12 : f32 to vector<1x2048xf32>
      %c0_13 = arith.constant 0 : index
      %c0_14 = arith.constant 0 : index
      %24 = vector.load %arg6[%c0_13, %c0_14] : memref<1x2048xf32, #tpu.memory_space<vmem>>, vector<1x2048xf32>
      tpu.vector_store %arg6[%c0_13, %c0_14], %23 {strides = array<i32>} : memref<1x2048xf32, #tpu.memory_space<vmem>>, vector<1x2048xf32>,
    } else {
    }
    %c0 = arith.constant 0 : index
    %c0_1 = arith.constant 0 : index
    %3 = vector.load %arg3[%c0, %c0_1] : memref<1x2048xf32, #tpu.memory_space<vmem>>, vector<1x2048xf32>
    %c0_2 = arith.constant 0 : index
    %c0_3 = arith.constant 0 : index
    %4 = vector.load %arg4[%c0_2, %c0_3] : memref<1x2048xf32, #tpu.memory_space<vmem>>, vector<1x2048xf32>
    %cst = arith.constant 0.000000e+00 : f32
    %5 = vector.broadcast %cst : f32 to vector<1x2048xf32>
    %6 = arith.maximumf %3, %5 : vector<1x2048xf32>
    %7 = arith.mulf %3, %4 : vector<1x2048xf32>
    %8 = arith.subf %6, %7 : vector<1x2048xf32>
    %9 = math.absf %3 : vector<1x2048xf32>
    %cst_4 = arith.constant 0.000000e+00 : f32
    %10 = vector.broadcast %cst_4 : f32 to vector<1x2048xf32>
    %11 = arith.subf %10, %9 : vector<1x2048xf32>
    %12 = math.exp %11 : vector<1x2048xf32>
    %13 = math.log1p %12 : vector<1x2048xf32>
    %14 = arith.addf %8, %13 : vector<1x2048xf32>
    %c0_5 = arith.constant 0 : index
    %c0_6 = arith.constant 0 : index
    %15 = vector.load %arg6[%c0_5, %c0_6] : memref<1x2048xf32, #tpu.memory_space<vmem>>, vector<1x2048xf32>
    %cst_7 = arith.constant dense<0.000000e+00> : vector<2048xf32>
    %16 = vector.multi_reduction <add>, %14, %cst_7 [0] : vector<1x2048xf32> to vector<2048xf32>
    %17 = vector.shape_cast %16 : vector<2048xf32> to vector<1x2048xf32>
    %18 = arith.addf %15, %17 : vector<1x2048xf32>
    %c0_8 = arith.constant 0 : index
    %c0_9 = arith.constant 0 : index
    %19 = vector.load %arg6[%c0_8, %c0_9] : memref<1x2048xf32, #tpu.memory_space<vmem>>, vector<1x2048xf32>
    tpu.vector_store %arg6[%c0_8, %c0_9], %18 {strides = array<i32>} : memref<1x2048xf32, #tpu.memory_space<vmem>>, vector<1x2048xf32>,
    %c0_i32_10 = arith.constant 0 : i32
    %20 = arith.cmpi eq, %arg1, %c0_i32_10 : i32
    %21 = arith.extui %20 : i1 to i32
    %c0_i32_11 = arith.constant 0 : i32
    %22 = arith.cmpi ne, %21, %c0_i32_11 : i32
    scf.if %22 {
      %c0_12 = arith.constant 0 : index
      %c0_13 = arith.constant 0 : index
      %23 = vector.load %arg6[%c0_12, %c0_13] : memref<1x2048xf32, #tpu.memory_space<vmem>>, vector<1x2048xf32>
      %24 = vector.shape_cast %23 : vector<1x2048xf32> to vector<1x1x2048xf32>
      %cst_14 = arith.constant dense<0.000000e+00> : vector<1xf32>
      %25 = vector.multi_reduction <add>, %24, %cst_14 [1, 2] : vector<1x1x2048xf32> to vector<1xf32>
      %26 = vector.shape_cast %25 : vector<1xf32> to vector<1x1x1xf32>
      %27 = vector.extract %26[0, 0, 0] : f32 from vector<1x1x1xf32>
      %c0_15 = arith.constant 0 : index
      %28 = memref.load %arg2[%c0_15] : memref<1xf32, #tpu.memory_space<smem>>
      %29 = arith.mulf %27, %28 : f32
      %cst_16 = arith.constant 0.000000e+00 : f32
      %30 = vector.broadcast %cst_16 : f32 to vector<1x8x128xf32>
      %31 = vector.broadcast %29 : f32 to vector<1x8x128xf32>
      %32 = arith.addf %30, %31 : vector<1x8x128xf32>
      %c0_17 = arith.constant 0 : index
      %c0_18 = arith.constant 0 : index
      %c0_19 = arith.constant 0 : index
      %33 = vector.load %arg5[%c0_17, %c0_18, %c0_19] : memref<1x8x128xf32, #tpu.memory_space<vmem>>, vector<1x8x128xf32>
      tpu.vector_store %arg5[%c0_17, %c0_18, %c0_19], %32 {strides = array<i32>} : memref<1x8x128xf32, #tpu.memory_space<vmem>>, vector<1x8x128xf32>,
    } else {
    }
    return
  }
  func.func @transform_0(%arg0: i32, %arg1: i32) -> i32 {
    %c0_i32 = arith.constant 0 : i32
    %c0_i32_0 = arith.constant 0 : i32
    return %c0_i32 : i32
  }
  func.func @transform_1(%arg0: i32, %arg1: i32) -> (i32, i32) {
    %c1_i32 = arith.constant 1 : i32
    %0 = arith.muli %arg0, %c1_i32 : i32
    %1 = arith.addi %0, %arg1 : i32
    %c0_i32 = arith.constant 0 : i32
    %c0_i32_0 = arith.constant 0 : i32
    return %1, %c0_i32 : i32, i32
  }
  func.func @transform_2(%arg0: i32, %arg1: i32) -> (i32, i32) {
    %c1_i32 = arith.constant 1 : i32
    %0 = arith.muli %arg0, %c1_i32 : i32
    %1 = arith.addi %0, %arg1 : i32
    %c0_i32 = arith.constant 0 : i32
    %c0_i32_0 = arith.constant 0 : i32
    return %1, %c0_i32 : i32, i32
  }
  func.func @transform_3(%arg0: i32, %arg1: i32) -> (i32, i32, i32) {
    %c0_i32 = arith.constant 0 : i32
    %c0_i32_0 = arith.constant 0 : i32
    %c0_i32_1 = arith.constant 0 : i32
    return %arg0, %c0_i32, %c0_i32_0 : i32, i32, i32
  }
}

</mosaic_0001>

<bundles_post_ra>
// kernel: tpu_custom_call.1
= control target key start
LH: loop header
LB: loop body
LE: loop exit
PB: predicated region body
PF: predicated region fallthrough
CT: control target
= control target key end

     0   :  { %9 = vsyncpa [#allocation5], 0  ;;  %s424_s0 = inlined_call_operand.<no memory space> [shape: f32[1], index: 0, kind: input, shape index: {}]   ;;  %s425_s1 = inlined_call_operand.hbm [shape: f32[1,2048], index: 1, kind: input, shape index: {}]   ;;  %s426_s2 = inlined_call_operand.hbm [shape: f32[1,2048], index: 2, kind: input, shape index: {}]   ;;  %s427_s3 = inlined_call_operand.hbm [shape: f32[1,8,128], index: 3, kind: output, shape index: {}]  }
   0x1   :  { %10 = vsyncpa [#allocation8], 0 }
   0x2   :  { %11 = vsyncpa [#allocation6], 0  ;;  %s336_s12 = smov [#allocation4]   ;;  %s337_s14 = smov [#allocation7]  }
   0x3   :  { %s24_s13 = sshll.u32 %s336_s12, 4  ;;  %s38_s15 = sshll.u32 %s337_s14, 4  ;;  %s25_s13 = int_to_ptr.vmem [resolvable:$true] %s24_s13  ;;  %s39_s15 = int_to_ptr.vmem [resolvable:$true] %s38_s15 }
   0x4   :  { %s264_s18 = scalar_lea.hbm %s425_s1, 256 }
   0x5   :  { %p265_p0 = scmp.ne.s32.totalorder %s425_s1, %s264_s18  ;;  %p268_p1 = scmp.lt.u32.totalorder %s264_s18, %s425_s1 }
   0x7   :  { %p270_p2 = pnand %p268_p1, %p265_p0 }
   0x9   :  { %273 = shalt.err (!%p270_p2)
}
   0xa   :  { %s274_s23 = scalar_lea.vmem %s25_s13, 256  ;;  %p279_p4 = scmp.lt.s32.totalorder %s25_s13, %s25_s13 }
   0xb   :  { %p275_p3 = scmp.ne.s32.totalorder %s25_s13, %s274_s23  ;;  %p280_p5 = scmp.lt.s32.totalorder %s274_s23, %s274_s23 }
   0xd   :  { %p281_p6 = por %p280_p5, %p279_p4 }
   0xf   :  { %p282_p7 = pnand %p281_p6, %p275_p3 }
  0x11   :  { %285 = shalt.err (!%p282_p7)
}
  0x12   :  { %27 = dma.hbm_to_vmem [thread:$0]  %s425_s1, 256, %s25_s13, [#allocation5]  }
  0x13   :  { %s286_s28 = scalar_lea.hbm %s426_s2, 256 }
  0x14   :  { %p287_p8 = scmp.ne.s32.totalorder %s426_s2, %s286_s28  ;;  %p290_p9 = scmp.lt.u32.totalorder %s286_s28, %s426_s2 }
  0x16   :  { %p292_p10 = pnand %p290_p9, %p287_p8 }
  0x18   :  { %295 = shalt.err (!%p292_p10)
}
  0x19   :  { %s296_s6 = scalar_lea.vmem %s39_s15, 256  ;;  %p301_p12 = scmp.lt.s32.totalorder %s39_s15, %s39_s15 }
  0x1a   :  { %p297_p11 = scmp.ne.s32.totalorder %s39_s15, %s296_s6  ;;  %p302_p13 = scmp.lt.s32.totalorder %s296_s6, %s296_s6 }
  0x1c   :  { %p303_p0 = por %p302_p13, %p301_p12 }
  0x1e   :  { %p304_p1 = pnand %p303_p0, %p297_p11 }
  0x20   :  { %307 = shalt.err (!%p304_p1)
}
  0x21   :  { %41 = dma.hbm_to_vmem [thread:$0]  %s426_s2, 256, %s39_s15, [#allocation8]  }
  0x22   :  { %330 = dma.done.wait [#allocation5], 256  }
  0x23   :  { %331 = vsyncadd [#allocation5], 4294967040 }
  0x24   :  { %332 = dma.done.wait [#allocation8], 256  }
  0x25   :  { %333 = vsyncadd [#allocation8], 4294967040  ;;  %v56_v0 = vld [vmem:[#allocation4] sm:$0xff]  ;;  %v57_v1 = vld [vmem:[#allocation4 + $0x8] sm:$0xff]  ;;  %v109_v14 = vlaneseq  ;;  %vm189_vm1 = vcmask 1040384   ;;  %s338_s2 = smov [#allocation9]  }
  0x26   :  { %v66_v2 = vand.u32 2147483647, %v56_v0  ;;  %v67_v3 = vand.u32 2147483647, %v57_v1  ;;  %v58_v13 = vld [vmem:[#allocation7] sm:$0xff]  ;;  %v60_v16 = vmax.f32 %v56_v0, 0.0 }
  0x27   :  { %v62_v17 = vmul.f32 %v58_v13, %v56_v0  ;;  %v383_v19 = vshrl.u32 %v109_v14, 7  ;;  %v59_v25 = vld [vmem:[#allocation7 + $0x8] sm:$0xff]  ;;  %v61_v35 = vmax.f32 %v57_v1, 0.0  ;;  %s241_s8 = sshll.u32 %s338_s2, 4  ;;  %s242_s8 = int_to_ptr.vmem [resolvable:$true] %s241_s8 }
  0x28   :  { %v68_v4 = vsub.f32 0.0, %v66_v2  ;;  %v69_v5 = vsub.f32 0.0, %v67_v3  ;;  %v63_v36 = vmul.f32 %v59_v25, %v57_v1  ;;  %s308_s13 = scalar_lea.vmem %s242_s8, 128  ;;  %p313_p3 = scmp.lt.s32.totalorder %s242_s8, %s242_s8 }
  0x29   :  { %v64_v23 = vsub.f32 %v60_v16, %v62_v17  ;;  %v111_v26 = vsub.s32 0, %v383_v19  ;;  %v115_v27 = vsub.s32 1, %v383_v19  ;;  %v119_v28 = vsub.s32 2, %v383_v19  ;;  %p309_p2 = scmp.ne.s32.totalorder %s242_s8, %s308_s13  ;;  %p314_p4 = scmp.lt.s32.totalorder %s308_s13, %s308_s13 }
  0x2a   :  { %v70_v6 = vmul.f32 1.442695, %v68_v4  ;;  %v72_v7 = vmul.f32 1.442695, %v69_v5  ;;  %v123_v34 = vsub.s32 3, %v383_v19  ;;  %v127_v40 = vsub.s32 4, %v383_v19 }
  0x2b   :  { %v131_v44 = vsub.s32 5, %v383_v19  ;;  %v65_v45 = vsub.f32 %v61_v35, %v63_v36  ;;  %v135_v46 = vsub.s32 6, %v383_v19  ;;  %v139_v54 = vsub.s32 7, %v383_v19  ;;  %p315_p5 = por %p314_p4, %p313_p3 }
  0x2c   :  { %256 = vpow2.f32 %v70_v6 }
  0x2d   :  { %258 = vpow2.f32 %v72_v7  ;;  %p316_p6 = pnand %p315_p5, %p309_p2 }
  0x36   :  { %v257_v8 = vpop.eup %256 }
  0x37   :  { %v259_v9 = vpop.eup %258  ;;  %v74_v10 = vadd.f32 1.0, %v257_v8  ;;  %v77_v12 = vmul.f32 -0.5, %v257_v8  ;;  %v80_v18 = vand.u32 2147483647, %v257_v8 }
  0x38   :  { %v83_v11 = vadd.f32 1.0, %v259_v9  ;;  %v86_v21 = vmul.f32 -0.5, %v259_v9  ;;  %v89_v32 = vand.u32 2147483647, %v259_v9 }
  0x39   :  { %260 = vlog2.f32 %v74_v10  ;;  %v78_v15 = vadd.f32 1.0, %v77_v12  ;;  %vm81_vm0 = vcmp.lt.f32.partialorder %v80_v18, 0.0004427343 }
  0x3a   :  { %262 = vlog2.f32 %v83_v11  ;;  %v87_v30 = vadd.f32 1.0, %v86_v21  ;;  %vm90_vm2 = vcmp.lt.f32.partialorder %v89_v32, 0.0004427343 }
  0x3b   :  { %v79_v20 = vmul.f32 %v257_v8, %v78_v15 }
  0x3c   :  { %v88_v42 = vmul.f32 %v259_v9, %v87_v30 }
  0x43   :  { %v261_v22 = vpop.eup %260 }
  0x44   :  { %v76_v24 = vmul.f32 0.6931472, %v261_v22  ;;  %v263_v31 = vpop.eup %262 }
  0x45   :  { %v85_v41 = vmul.f32 0.6931472, %v263_v31 }
  0x46   :  { %v82_v29 = vsel %vm81_vm0, %v79_v20, %v76_v24 }
  0x47   :  { %v92_v33 = vadd.f32 %v82_v29, %v64_v23  ;;  %v91_v51 = vsel %vm90_vm2, %v88_v42, %v85_v41 }
  0x48   :  { %v93_v57 = vadd.f32 %v91_v51, %v65_v45 }
  0x49   :  { %v112_v37 = vrot.slane %v92_v33, %v111_v26  ;;  %v116_v38 = vrot.slane %v92_v33, %v115_v27  ;;  %v120_v39 = vrot.slane %v92_v33, %v119_v28  ;;  %v124_v43 = vrot.slane %v92_v33, %v123_v34 }
  0x4a   :  { %v128_v47 = vrot.slane %v92_v33, %v127_v40  ;;  %v132_v53 = vrot.slane %v92_v33, %v131_v44  ;;  %v136_v58 = vrot.slane %v92_v33, %v135_v46  ;;  %v140_v61 = vrot.slane %v92_v33, %v139_v54 }
  0x4b   :  { %v190_v48 = vsel %vm189_vm1, %v112_v37, 0.0  ;;  %v191_v49 = vsel %vm189_vm1, %v116_v38, 0.0  ;;  %v193_v50 = vsel %vm189_vm1, %v120_v39, 0.0  ;;  %v195_v55 = vsel %vm189_vm1, %v124_v43, 0.0 }
  0x4c   :  { %v192_v52 = vadd.f32 %v191_v49, %v190_v48  ;;  %v197_v59 = vsel %vm189_vm1, %v128_v47, 0.0  ;;  %v199_v62 = vsel %vm189_vm1, %v132_v53, 0.0  ;;  %v144_v0 = vrot.slane %v93_v57, %v111_v26 }
  0x4d   :  { %v201_v1 = vsel %vm189_vm1, %v136_v58, 0.0  ;;  %v148_v3 = vrot.slane %v93_v57, %v115_v27  ;;  %v203_v4 = vsel %vm189_vm1, %v140_v61, 0.0  ;;  %v152_v6 = vrot.slane %v93_v57, %v119_v28 }
  0x4e   :  { %v194_v56 = vadd.f32 %v193_v50, %v192_v52  ;;  %v205_v7 = vsel %vm189_vm1, %v144_v0, 0.0  ;;  %v156_v9 = vrot.slane %v93_v57, %v123_v34  ;;  %v160_v12 = vrot.slane %v93_v57, %v127_v40 }
  0x4f   :  { %v207_v10 = vsel %vm189_vm1, %v148_v3, 0.0  ;;  %v209_v13 = vsel %vm189_vm1, %v152_v6, 0.0  ;;  %v164_v15 = vrot.slane %v93_v57, %v131_v44  ;;  %v168_v18 = vrot.slane %v93_v57, %v135_v46 }
  0x50   :  { %v196_v60 = vadd.f32 %v195_v55, %v194_v56  ;;  %v211_v16 = vsel %vm189_vm1, %v156_v9, 0.0  ;;  %v213_v19 = vsel %vm189_vm1, %v160_v12, 0.0  ;;  %v172_v21 = vrot.slane %v93_v57, %v139_v54 }
  0x51   :  { %v215_v22 = vsel %vm189_vm1, %v164_v15, 0.0  ;;  %v217_v24 = vsel %vm189_vm1, %v168_v18, 0.0 }
  0x52   :  { %v198_v63 = vadd.f32 %v197_v59, %v196_v60  ;;  %v219_v26 = vsel %vm189_vm1, %v172_v21, 0.0 }
  0x54   :  { %v200_v2 = vadd.f32 %v199_v62, %v198_v63 }
  0x56   :  { %v202_v5 = vadd.f32 %v201_v1, %v200_v2 }
  0x58   :  { %v204_v8 = vadd.f32 %v203_v4, %v202_v5 }
  0x5a   :  { %v206_v11 = vadd.f32 %v205_v7, %v204_v8 }
  0x5c   :  { %v208_v14 = vadd.f32 %v207_v10, %v206_v11 }
  0x5e   :  { %v210_v17 = vadd.f32 %v209_v13, %v208_v14 }
  0x60   :  { %v212_v20 = vadd.f32 %v211_v16, %v210_v17 }
  0x62   :  { %v214_v23 = vadd.f32 %v213_v19, %v212_v20 }
  0x64   :  { %v216_v25 = vadd.f32 %v215_v22, %v214_v23 }
  0x66   :  { %v218_v27 = vadd.f32 %v217_v24, %v216_v25 }
  0x68   :  { %v220_v28 = vadd.f32 %v219_v26, %v218_v27 }
  0x6a   :  { %221 = vadd.xlane.f32.xlu0 %v220_v28 }
  0xf7   :  { %v222_v29 = vpop.xlane.xlu0 %221 }
  0xf8   :  { %v223_v30 = vrot.slane %v222_v29, 4 }
  0xfa   :  { %v224_v31 = vadd.f32 %v223_v30, %v222_v29 }
  0xfc   :  { %v225_v32 = vrot.slane %v224_v31, 2 }
  0xfe   :  { %v226_v33 = vadd.f32 %v225_v32, %v224_v31 }
 0x100   :  { %v227_v34 = vrot.slane %v226_v33, 1 }
 0x102   :  { %v228_v35 = vadd.f32 %v227_v34, %v226_v33 }
 0x104   :  { %251 = vpush %v228_v35 }
 0x135   :  { %s252_s9 = spop %251 }
 0x136   :  { %s231_s12 = smul.f32 %s252_s9, %s424_s0 }
 0x138   :  { %v232_v36 = vstv %s231_s12 }
 0x139   :  { %234 = vst [vmem:[#allocation9] sm:$0xff] %v232_v36 }
 0x13a   :  { %319 = shalt.err (!%p316_p6)
}
 0x13b   :  { %s320_s16 = scalar_lea.hbm %s427_s3, 128 }
 0x13c   :  { %p321_p7 = scmp.ne.s32.totalorder %s427_s3, %s320_s16  ;;  %p324_p8 = scmp.lt.u32.totalorder %s320_s16, %s427_s3 }
 0x13e   :  { %p326_p9 = pnand %p324_p8, %p321_p7 }
 0x140   :  { %329 = shalt.err (!%p326_p9)
}
 0x141   :  { %244 = dma.vmem_to_hbm [thread:$0]  %s242_s8, 128, %s427_s3, [#allocation6]  }
 0x142   :  { %334 = dma.done.wait [#allocation6], 128  }
 0x143   :  { %335 = vsyncadd [#allocation6], 4294967168 }
 0x144   :  { %248 = vsyncpa [#allocation5], 1 }
 0x145   :  { %249 = vsyncpa [#allocation8], 1 }
 0x146   :  { %250 = vsyncpa [#allocation6], 1 }

</bundles_post_ra>
